<compile_context>
chip_gen: v6e
topology: v6e:2x2x1
jax: 0.10.0
libtpu: 0.0.40
codegen_flags: <defaults>
</compile_context>

<pallas_src>
import jax
import jax.numpy as jnp
from jax import lax
from jax.experimental import pallas as pl
from jax.experimental.pallas import tpu as pltpu


def policy_kernel(s_ref, a_ref, w1sT_ref, w1aT_ref, b1_ref, w2r_ref, b2_ref, o_ref):
    # fc1 on the (virtually) concatenated features, as a split matmul in natural
    # (batch, feature) layout:  h = s @ W1s^T + a @ W1a^T + b1      -> (tb, H)
    h = jnp.dot(s_ref[...], w1sT_ref[...], preferred_element_type=jnp.float32)
    h = h + jnp.dot(a_ref[...], w1aT_ref[...], preferred_element_type=jnp.float32)
    h = jnp.maximum(h + b1_ref[...], 0.0)  # (1, H) bias sublane-broadcast + ReLU

    # dropout(p=0.1): identity in eval/inference mode.
    # TODO(synk): training-mode dropout would need pltpu.prng_seed / prng_random_bits.

    # fc2 with out_features == 1: contract the hidden axis of h against w2 so the batch
    # axis lands on lanes -> lane-dense (1, tb) output row.  w2 is replicated to 8
    # sublanes so the MXU tile is a standard (8, H) x (tb, H)^T shape.
    res = lax.dot_general(
        w2r_ref[...], h,
        dimension_numbers=(((1,), (1,)), ((), ())),
        preferred_element_type=jnp.float32,
    )                                              # (8, tb)
    logits = res[0:1, :] + b2_ref[0, 0]            # (1, tb)

    # log_softmax over the module's dim=1 (a size-1 axis) is exactly
    #   x - logsumexp(x) = x - x   (0 for finite logits, NaN/Inf -> NaN like torch).
    o_ref[...] = logits - logits


def _pick_batch_tile(B, max_tile=4096):
    """Largest batch tile that keeps lane-aligned blocks: either the full batch
    (block == full array, no alignment constraint) or a multiple of 128 dividing B."""
    if B <= max_tile:
        return B
    t = max_tile - (max_tile % 128)
    while t >= 128:
        if B % t == 0:
            return t
        t -= 128
    raise ValueError("for batch > 4096, batch must be divisible by a multiple of 128")


def policy_network_forward(state_emb, action_emb, w1, b1, w2, b2):
    """state_emb, action_emb: (B, D) f32.
    w1: (H, 2D), b1: (H,), w2: (1, H), b2: (1,)   -- PyTorch nn.Linear layout.
    Returns (B,) f32 == log_softmax(fc2(relu(fc1(cat))), dim=1).squeeze(1).
    """
    B, D = state_emb.shape
    H = w1.shape[0]
    assert action_emb.shape == (B, D)
    assert w1.shape == (H, 2 * D) and b1.shape == (H,)
    assert w2.shape == (1, H) and b2.shape == (1,)

    tb = _pick_batch_tile(B)
    grid = (B // tb,)

    # Layout plumbing on the tiny parameter tensors only (a few KB, fused by XLA).
    w1sT = w1[:, :D].T                      # (D, H)
    w1aT = w1[:, D:].T                      # (D, H)
    b1r = b1.reshape(1, H)                  # (1, H) sublane-broadcastable row
    w2r = jnp.tile(w2.reshape(1, H), (8, 1))  # (8, H) sublane-replicated
    b2s = b2.reshape(1, 1)                  # scalar, goes to SMEM

    out = pl.pallas_call(
        policy_kernel,
        out_shape=jax.ShapeDtypeStruct((1, B), jnp.float32),
        grid=grid,
        in_specs=[
            pl.BlockSpec((tb, D), lambda i: (i, 0)),   # state,  natural layout, tiled over batch
            pl.BlockSpec((tb, D), lambda i: (i, 0)),   # action
            pl.BlockSpec((D, H), lambda i: (0, 0)),    # W1_state^T  (VMEM-resident)
            pl.BlockSpec((D, H), lambda i: (0, 0)),    # W1_action^T (VMEM-resident)
            pl.BlockSpec((1, H), lambda i: (0, 0)),    # b1 row
            pl.BlockSpec((8, H), lambda i: (0, 0)),    # w2 replicated rows
            pl.BlockSpec(memory_space=pltpu.MemorySpace.SMEM),  # b2 scalar
        ],
        out_specs=pl.BlockSpec((1, tb), lambda i: (0, i)),      # lane-dense output row
        compiler_params=pltpu.CompilerParams(
            dimension_semantics=("parallel",),     # batch tiles shard across TensorCores
            vmem_limit_bytes=32 * 1024 * 1024,     # far above what the tiny tiles need
        ),
    )(state_emb, action_emb, w1sT, w1aT, b1r, w2r, b2s)

    return out[0]  # (B,)  == .squeeze(1)


if __name__ == "__main__":
    input_size = 16
    hidden_size = 32
    batch = 256

    key = jax.random.PRNGKey(0)
    k_s, k_a, kw1, kb1, kw2, kb2 = jax.random.split(key, 6)

    state_emb = jax.random.normal(k_s, (batch, input_size), jnp.float32)
    action_emb = jax.random.normal(k_a, (batch, input_size), jnp.float32)

    # PyTorch-style init: uniform(-1/sqrt(fan_in), 1/sqrt(fan_in)), nn.Linear layout.
    fan1 = 2 * input_size
    lim1 = 1.0 / float(fan1) ** 0.5
    w1 = jax.random.uniform(kw1, (hidden_size, fan1), jnp.float32, -lim1, lim1)
    b1 = jax.random.uniform(kb1, (hidden_size,), jnp.float32, -lim1, lim1)
    lim2 = 1.0 / float(hidden_size) ** 0.5
    w2 = jax.random.uniform(kw2, (1, hidden_size), jnp.float32, -lim2, lim2)
    b2 = jax.random.uniform(kb2, (1,), jnp.float32, -lim2, lim2)

    out = policy_network_forward(state_emb, action_emb, w1, b1, w2, b2)
    jax.block_until_ready(out)

    # Pure-JAX reference of the PyTorch forward (eval mode: dropout = identity).
    combined = jnp.concatenate([state_emb, action_emb], axis=1)
    h = jnp.maximum(combined @ w1.T + b1, 0.0)
    logits = h @ w2.T + b2                      # (B, 1)
    ref = jax.nn.log_softmax(logits, axis=1)[:, 0]

    assert out.shape == (batch,)
    assert jnp.allclose(out, ref, atol=1e-5), (out[:4], ref[:4])
    print("KERNEL_OK")
</pallas_src>

<mosaic_0001>
module attributes {stable_mosaic.version = 11 : i64} {
  func.func @policy_kernel(%arg0: i32, %arg1: memref<256x16xf32, #tpu.memory_space<vmem>>, %arg2: memref<256x16xf32, #tpu.memory_space<vmem>>, %arg3: memref<16x32xf32, #tpu.memory_space<vmem>>, %arg4: memref<16x32xf32, #tpu.memory_space<vmem>>, %arg5: memref<1x32xf32, #tpu.memory_space<vmem>>, %arg6: memref<8x32xf32, #tpu.memory_space<vmem>>, %arg7: memref<1x1xf32, #tpu.memory_space<smem>>, %arg8: memref<1x256xf32, #tpu.memory_space<vmem>>) attributes {dimension_semantics = [#tpu.dimension_semantics<parallel>], iteration_bounds = array<i64: 1>, scalar_prefetch = 0 : i64, scratch_operands = 0 : i64, tpu.core_type = #tpu.core_type<tc>, window_params = [{transform_indices = @transform_0, window_bounds = array<i64: 256, 16>}, {transform_indices = @transform_1, window_bounds = array<i64: 256, 16>}, {pipeline_mode = #tpu.pipeline_mode<synchronous>, transform_indices = @transform_2, window_bounds = array<i64: 16, 32>}, {pipeline_mode = #tpu.pipeline_mode<synchronous>, transform_indices = @transform_3, window_bounds = array<i64: 16, 32>}, {pipeline_mode = #tpu.pipeline_mode<synchronous>, transform_indices = @transform_4, window_bounds = array<i64: 1, 32>}, {pipeline_mode = #tpu.pipeline_mode<synchronous>, transform_indices = @transform_5, window_bounds = array<i64: 8, 32>}, {transform_indices = @transform_6, window_bounds = array<i64: 1, 1>}, {transform_indices = @transform_7, window_bounds = array<i64: 1, 256>}]} {
    %c0 = arith.constant 0 : index
    %c0_0 = arith.constant 0 : index
    %0 = vector.load %arg1[%c0, %c0_0] : memref<256x16xf32, #tpu.memory_space<vmem>>, vector<256x16xf32>
    %c0_1 = arith.constant 0 : index
    %c0_2 = arith.constant 0 : index
    %1 = vector.load %arg3[%c0_1, %c0_2] : memref<16x32xf32, #tpu.memory_space<vmem>>, vector<16x32xf32>
    %cst = arith.constant dense<0.000000e+00> : vector<256x32xf32>
    %2 = tpu.matmul %0, %1, %cst {dimension_numbers = #tpu.dot_dimension_numbers<[1], [0], [0], [1], [0, 0, 1, 1], [], []>} : vector<256x16xf32>, vector<16x32xf32>, vector<256x32xf32> -> vector<256x32xf32>
    %c0_3 = arith.constant 0 : index
    %c0_4 = arith.constant 0 : index
    %3 = vector.load %arg2[%c0_3, %c0_4] : memref<256x16xf32, #tpu.memory_space<vmem>>, vector<256x16xf32>
    %c0_5 = arith.constant 0 : index
    %c0_6 = arith.constant 0 : index
    %4 = vector.load %arg4[%c0_5, %c0_6] : memref<16x32xf32, #tpu.memory_space<vmem>>, vector<16x32xf32>
    %cst_7 = arith.constant dense<0.000000e+00> : vector<256x32xf32>
    %5 = tpu.matmul %3, %4, %cst_7 {dimension_numbers = #tpu.dot_dimension_numbers<[1], [0], [0], [1], [0, 0, 1, 1], [], []>} : vector<256x16xf32>, vector<16x32xf32>, vector<256x32xf32> -> vector<256x32xf32>
    %6 = arith.addf %2, %5 : vector<256x32xf32>
    %c0_8 = arith.constant 0 : index
    %c0_9 = arith.constant 0 : index
    %7 = vector.load %arg5[%c0_8, %c0_9] : memref<1x32xf32, #tpu.memory_space<vmem>>, vector<1x32xf32>
    %8 = vector.broadcast %7 : vector<1x32xf32> to vector<256x32xf32>
    %9 = arith.addf %6, %8 : vector<256x32xf32>
    %cst_10 = arith.constant 0.000000e+00 : f32
    %10 = vector.broadcast %cst_10 : f32 to vector<256x32xf32>
    %11 = arith.maximumf %9, %10 : vector<256x32xf32>
    %c0_11 = arith.constant 0 : index
    %c0_12 = arith.constant 0 : index
    %12 = vector.load %arg6[%c0_11, %c0_12] : memref<8x32xf32, #tpu.memory_space<vmem>>, vector<8x32xf32>
    %cst_13 = arith.constant dense<0.000000e+00> : vector<8x256xf32>
    %13 = tpu.matmul %12, %11, %cst_13 {dimension_numbers = #tpu.dot_dimension_numbers<[1], [1], [0], [0], [0, 0, 1, 0], [], []>} : vector<8x32xf32>, vector<256x32xf32>, vector<8x256xf32> -> vector<8x256xf32>
    %14 = vector.extract_strided_slice %13 {offsets = [0, 0], sizes = [1, 256], strides = [1, 1]} : vector<8x256xf32> to vector<1x256xf32>
    %c0_14 = arith.constant 0 : index
    %c0_15 = arith.constant 0 : index
    %15 = memref.load %arg7[%c0_14, %c0_15] : memref<1x1xf32, #tpu.memory_space<smem>>
    %16 = vector.broadcast %15 : f32 to vector<1x256xf32>
    %17 = arith.addf %14, %16 : vector<1x256xf32>
    %18 = arith.subf %17, %17 : vector<1x256xf32>
    %c0_16 = arith.constant 0 : index
    %c0_17 = arith.constant 0 : index
    %19 = vector.load %arg8[%c0_16, %c0_17] : memref<1x256xf32, #tpu.memory_space<vmem>>, vector<1x256xf32>
    tpu.vector_store %arg8[%c0_16, %c0_17], %18 {strides = array<i32>} : memref<1x256xf32, #tpu.memory_space<vmem>>, vector<1x256xf32>,
    return
  }
  func.func @transform_0(%arg0: i32) -> (i32, i32) {
    %c0_i32 = arith.constant 0 : i32
    %c0_i32_0 = arith.constant 0 : i32
    return %arg0, %c0_i32 : i32, i32
  }
  func.func @transform_1(%arg0: i32) -> (i32, i32) {
    %c0_i32 = arith.constant 0 : i32
    %c0_i32_0 = arith.constant 0 : i32
    return %arg0, %c0_i32 : i32, i32
  }
  func.func @transform_2(%arg0: i32) -> (i32, i32) {
    %c0_i32 = arith.constant 0 : i32
    %c0_i32_0 = arith.constant 0 : i32
    %c0_i32_1 = arith.constant 0 : i32
    return %c0_i32, %c0_i32_0 : i32, i32
  }
  func.func @transform_3(%arg0: i32) -> (i32, i32) {
    %c0_i32 = arith.constant 0 : i32
    %c0_i32_0 = arith.constant 0 : i32
    %c0_i32_1 = arith.constant 0 : i32
    return %c0_i32, %c0_i32_0 : i32, i32
  }
  func.func @transform_4(%arg0: i32) -> (i32, i32) {
    %c0_i32 = arith.constant 0 : i32
    %c0_i32_0 = arith.constant 0 : i32
    %c0_i32_1 = arith.constant 0 : i32
    return %c0_i32, %c0_i32_0 : i32, i32
  }
  func.func @transform_5(%arg0: i32) -> (i32, i32) {
    %c0_i32 = arith.constant 0 : i32
    %c0_i32_0 = arith.constant 0 : i32
    %c0_i32_1 = arith.constant 0 : i32
    return %c0_i32, %c0_i32_0 : i32, i32
  }
  func.func @transform_6(%arg0: i32) -> (i32, i32) {
    %c0_i32 = arith.constant 0 : i32
    %c0_i32_0 = arith.constant 0 : i32
    %c0_i32_1 = arith.constant 0 : i32
    return %c0_i32, %c0_i32_0 : i32, i32
  }
  func.func @transform_7(%arg0: i32) -> (i32, i32) {
    %c0_i32 = arith.constant 0 : i32
    %c0_i32_0 = arith.constant 0 : i32
    return %c0_i32, %arg0 : i32, i32
  }
}

</mosaic_0001>

<bundles_post_ra>
// kernel: tpu_custom_call.1
= control target key start
LH: loop header
LB: loop body
LE: loop exit
PB: predicated region body
PF: predicated region fallthrough
CT: control target
= control target key end

     0   :  { %vm96_vm0 = vcmask 130048   ;;  %s1825_s0 = inlined_call_operand.vmem [shape: f32[256,16], index: 0, kind: input, shape index: {}]   ;;  %s1826_s1 = inlined_call_operand.vmem [shape: f32[256,16], index: 1, kind: input, shape index: {}]   ;;  %s1827_s2 = inlined_call_operand.vmem [shape: f32[16,32], index: 2, kind: input, shape index: {}]   ;;  %s1828_s3 = inlined_call_operand.vmem [shape: f32[16,32], index: 3, kind: input, shape index: {}]   ;;  %s1829_s4 = inlined_call_operand.vmem [shape: f32[1,32], index: 4, kind: input, shape index: {}]   ;;  %s1830_s5 = inlined_call_operand.vmem [shape: f32[8,32], index: 5, kind: input, shape index: {}]   ;;  %s1831_s6 = inlined_call_operand.<no memory space> [shape: f32[1,1], index: 6, kind: input, shape index: {}]   ;;  %s1832_s7 = inlined_call_operand.hbm [shape: f32[1,256], index: 7, kind: output, shape index: {}]  }
   0x1   :  { %v95_v0 = vld [vmem:[%s1828_s3 + $0x8] sm:$0xff]  ;;  %v94_v2 = vld [vmem:[%s1828_s3] sm:$0xff]  ;;  %v64_v8 = vld [vmem:[%s1826_s1 + $0x10] sm:$0xff] }
   0x2   :  { %v61_v1 = vld [vmem:[%s1827_s2 + $0x8] sm:$0xff]  ;;  %1225 = vmatprep.subr.mxu0 %v95_v0  ;;  %v60_v3 = vld [vmem:[%s1827_s2] sm:$0xff]  ;;  %v30_v9 = vld [vmem:[%s1825_s0 + $0x10] sm:$0xff] }
   0x3   :  { %1277 = vmatprep.subr.mxu1 %v61_v1  ;;  %v62_v4 = vld [vmem:[%s1826_s1] sm:$0xff]  ;;  %1226 = vmatpush3.msra.mxu0 %v95_v0  ;;  %v63_v6 = vld [vmem:[%s1826_s1 + $0x8] sm:$0xff]  ;;  %v65_v10 = vld [vmem:[%s1826_s1 + $0x18] sm:$0xff] }
   0x4   :  { %1278 = vmatpush3.msra.mxu1 %v61_v1  ;;  %v28_v5 = vld [vmem:[%s1825_s0] sm:$0xff]  ;;  %1227 = vmatprep.subr.mxu0 %v94_v2  ;;  %v29_v7 = vld [vmem:[%s1825_s0 + $0x8] sm:$0xff]  ;;  %v31_v11 = vld [vmem:[%s1825_s0 + $0x18] sm:$0xff] }
   0x5   :  { %1279 = vmatprep.subr.mxu1 %v60_v3  ;;  %1228 = vmatpush3.msra.mxu0 %v94_v2  ;;  %v66_v12 = vld [vmem:[%s1826_s1 + $0x20] sm:$0xff]  ;;  %v67_v14 = vld [vmem:[%s1826_s1 + $0x28] sm:$0xff]  ;;  %v68_v16 = vld [vmem:[%s1826_s1 + $0x30] sm:$0xff] }
   0x6   :  { %1229 = vmatprep.mubr.msk.f32.mxu0 %vm96_vm0, %v62_v4  ;;  %1280 = vmatpush3.msra.mxu1 %v60_v3  ;;  %v32_v13 = vld [vmem:[%s1825_s0 + $0x20] sm:$0xff]  ;;  %v33_v15 = vld [vmem:[%s1825_s0 + $0x28] sm:$0xff]  ;;  %v34_v17 = vld [vmem:[%s1825_s0 + $0x30] sm:$0xff] }
   0x7   :  { %1281 = vmatprep.mubr.msk.f32.mxu1 %vm96_vm0, %v28_v5  ;;  %1230 = vmatmul.mubr.msk.f32.vlgmr.msra.gmra.mxu0 %vm96_vm0, %v63_v6  ;;  %v69_v18 = vld [vmem:[%s1826_s1 + $0x38] sm:$0xff]  ;;  %v70_v20 = vld [vmem:[%s1826_s1 + $0x40] sm:$0xff]  ;;  %v71_v22 = vld [vmem:[%s1826_s1 + $0x48] sm:$0xff] }
   0x8   :  { %1282 = vmatmul.mubr.msk.f32.vlgmr.msra.gmra.mxu1 %vm96_vm0, %v29_v7  ;;  %1232 = vmatprep.mubr.msk.f32.mxu0 %vm96_vm0, %v64_v8  ;;  %v35_v19 = vld [vmem:[%s1825_s0 + $0x38] sm:$0xff]  ;;  %v36_v21 = vld [vmem:[%s1825_s0 + $0x40] sm:$0xff]  ;;  %v37_v23 = vld [vmem:[%s1825_s0 + $0x48] sm:$0xff] }
   0x9   :  { %1284 = vmatprep.mubr.msk.f32.mxu1 %vm96_vm0, %v30_v9  ;;  %v72_v24 = vld [vmem:[%s1826_s1 + $0x50] sm:$0xff] }
   0xa   :  { %v38_v25 = vld [vmem:[%s1825_s0 + $0x50] sm:$0xff] }
   0xb   :  { %1233 = vmatmul.mubr.msk.f32.gmra.mxu0 %vm96_vm0, %v65_v10 }
   0xc   :  { %1285 = vmatmul.mubr.msk.f32.gmra.mxu1 %vm96_vm0, %v31_v11  ;;  %1235 = vmatprep.mubr.msk.f32.mxu0 %vm96_vm0, %v66_v12 }
   0xd   :  { %1287 = vmatprep.mubr.msk.f32.mxu1 %vm96_vm0, %v32_v13 }
   0xf   :  { %1236 = vmatmul.mubr.msk.f32.gmra.mxu0 %vm96_vm0, %v67_v14 }
  0x10   :  { %1288 = vmatmul.mubr.msk.f32.gmra.mxu1 %vm96_vm0, %v33_v15  ;;  %1238 = vmatprep.mubr.msk.f32.mxu0 %vm96_vm0, %v68_v16 }
  0x11   :  { %1290 = vmatprep.mubr.msk.f32.mxu1 %vm96_vm0, %v34_v17 }
  0x13   :  { %1239 = vmatmul.mubr.msk.f32.gmra.mxu0 %vm96_vm0, %v69_v18 }
  0x14   :  { %1291 = vmatmul.mubr.msk.f32.gmra.mxu1 %vm96_vm0, %v35_v19  ;;  %1241 = vmatprep.mubr.msk.f32.mxu0 %vm96_vm0, %v70_v20 }
  0x15   :  { %1293 = vmatprep.mubr.msk.f32.mxu1 %vm96_vm0, %v36_v21 }
  0x17   :  { %1242 = vmatmul.mubr.msk.f32.gmra.mxu0 %vm96_vm0, %v71_v22 }
  0x18   :  { %1294 = vmatmul.mubr.msk.f32.gmra.mxu1 %vm96_vm0, %v37_v23 }
  0x19   :  { %13 = vsyncpa [#allocation4], 0  ;;  %1244 = vmatprep.mubr.msk.f32.mxu0 %vm96_vm0, %v72_v24  ;;  %1296 = vmatprep.mubr.msk.f32.mxu1 %vm96_vm0, %v38_v25  ;;  %v73_v26 = vld [vmem:[%s1826_s1 + $0x58] sm:$0xff]  ;;  %v74_v28 = vld [vmem:[%s1826_s1 + $0x60] sm:$0xff]  ;;  %vm811_vm1 = vcmask 261120   ;;  %s1354_s13 = smov [#allocation3]  }
  0x1a   :  { %v39_v27 = vld [vmem:[%s1825_s0 + $0x58] sm:$0xff]  ;;  %v40_v29 = vld [vmem:[%s1825_s0 + $0x60] sm:$0xff]  ;;  %v75_v30 = vld [vmem:[%s1826_s1 + $0x68] sm:$0xff]  ;;  %s1017_s14 = sshll.u32 %s1354_s13, 4  ;;  %s1018_s14 = int_to_ptr.vmem [resolvable:$true] %s1017_s14 }
  0x1b   :  { %1245 = vmatmul.mubr.msk.f32.gmra.mxu0 %vm96_vm0, %v73_v26  ;;  %v41_v31 = vld [vmem:[%s1825_s0 + $0x68] sm:$0xff]  ;;  %v76_v32 = vld [vmem:[%s1826_s1 + $0x70] sm:$0xff]  ;;  %v77_v34 = vld [vmem:[%s1826_s1 + $0x78] sm:$0xff]  ;;  %s1331_s15 = scalar_lea.vmem %s1018_s14, 32  ;;  %p1336_p1 = scmp.lt.s32.totalorder %s1018_s14, %s1018_s14 }
  0x1c   :  { %1297 = vmatmul.mubr.msk.f32.gmra.mxu1 %vm96_vm0, %v39_v27  ;;  %1247 = vmatprep.mubr.msk.f32.mxu0 %vm96_vm0, %v74_v28  ;;  %v42_v33 = vld [vmem:[%s1825_s0 + $0x70] sm:$0xff]  ;;  %v43_v35 = vld [vmem:[%s1825_s0 + $0x78] sm:$0xff]  ;;  %v78_v36 = vld [vmem:[%s1826_s1 + $0x80] sm:$0xff]  ;;  %p1332_p0 = scmp.ne.s32.totalorder %s1018_s14, %s1331_s15  ;;  %p1337_p2 = scmp.lt.s32.totalorder %s1331_s15, %s1331_s15 }
  0x1d   :  { %1299 = vmatprep.mubr.msk.f32.mxu1 %vm96_vm0, %v40_v29  ;;  %v44_v37 = vld [vmem:[%s1825_s0 + $0x80] sm:$0xff]  ;;  %v79_v38 = vld [vmem:[%s1826_s1 + $0x88] sm:$0xff]  ;;  %v80_v40 = vld [vmem:[%s1826_s1 + $0x90] sm:$0xff] }
  0x1e   :  { %v45_v39 = vld [vmem:[%s1825_s0 + $0x88] sm:$0xff]  ;;  %v46_v41 = vld [vmem:[%s1825_s0 + $0x90] sm:$0xff]  ;;  %v81_v42 = vld [vmem:[%s1826_s1 + $0x98] sm:$0xff]  ;;  %p1338_p3 = por %p1337_p2, %p1336_p1 }
  0x1f   :  { %1248 = vmatmul.mubr.msk.f32.gmra.mxu0 %vm96_vm0, %v75_v30  ;;  %v47_v43 = vld [vmem:[%s1825_s0 + $0x98] sm:$0xff]  ;;  %v82_v44 = vld [vmem:[%s1826_s1 + $0xa0] sm:$0xff]  ;;  %v83_v46 = vld [vmem:[%s1826_s1 + $0xa8] sm:$0xff] }
  0x20   :  { %1300 = vmatmul.mubr.msk.f32.gmra.mxu1 %vm96_vm0, %v41_v31  ;;  %1250 = vmatprep.mubr.msk.f32.mxu0 %vm96_vm0, %v76_v32  ;;  %v48_v45 = vld [vmem:[%s1825_s0 + $0xa0] sm:$0xff]  ;;  %v49_v47 = vld [vmem:[%s1825_s0 + $0xa8] sm:$0xff]  ;;  %v84_v48 = vld [vmem:[%s1826_s1 + $0xb0] sm:$0xff]  ;;  %p1339_p4 = pnand %p1338_p3, %p1332_p0 }
  0x21   :  { %1302 = vmatprep.mubr.msk.f32.mxu1 %vm96_vm0, %v42_v33  ;;  %v50_v49 = vld [vmem:[%s1825_s0 + $0xb0] sm:$0xff]  ;;  %v85_v50 = vld [vmem:[%s1826_s1 + $0xb8] sm:$0xff]  ;;  %v86_v52 = vld [vmem:[%s1826_s1 + $0xc0] sm:$0xff] }
  0x22   :  { %v51_v51 = vld [vmem:[%s1825_s0 + $0xb8] sm:$0xff]  ;;  %v52_v53 = vld [vmem:[%s1825_s0 + $0xc0] sm:$0xff]  ;;  %v87_v54 = vld [vmem:[%s1826_s1 + $0xc8] sm:$0xff] }
  0x23   :  { %1251 = vmatmul.mubr.msk.f32.gmra.mxu0 %vm96_vm0, %v77_v34  ;;  %v53_v55 = vld [vmem:[%s1825_s0 + $0xc8] sm:$0xff]  ;;  %v88_v56 = vld [vmem:[%s1826_s1 + $0xd0] sm:$0xff]  ;;  %v89_v58 = vld [vmem:[%s1826_s1 + $0xd8] sm:$0xff] }
  0x24   :  { %1303 = vmatmul.mubr.msk.f32.gmra.mxu1 %vm96_vm0, %v43_v35  ;;  %1253 = vmatprep.mubr.msk.f32.mxu0 %vm96_vm0, %v78_v36  ;;  %v54_v57 = vld [vmem:[%s1825_s0 + $0xd0] sm:$0xff]  ;;  %v55_v59 = vld [vmem:[%s1825_s0 + $0xd8] sm:$0xff]  ;;  %v90_v60 = vld [vmem:[%s1826_s1 + $0xe0] sm:$0xff] }
  0x25   :  { %1305 = vmatprep.mubr.msk.f32.mxu1 %vm96_vm0, %v44_v37  ;;  %v56_v61 = vld [vmem:[%s1825_s0 + $0xe0] sm:$0xff]  ;;  %v91_v62 = vld [vmem:[%s1826_s1 + $0xe8] sm:$0xff]  ;;  %v92_v0 = vld [vmem:[%s1826_s1 + $0xf0] sm:$0xff] }
  0x26   :  { %v57_v63 = vld [vmem:[%s1825_s0 + $0xe8] sm:$0xff]  ;;  %v58_v1 = vld [vmem:[%s1825_s0 + $0xf0] sm:$0xff]  ;;  %v93_v2 = vld [vmem:[%s1826_s1 + $0xf8] sm:$0xff] }
  0x27   :  { %1254 = vmatmul.mubr.msk.f32.gmra.mxu0 %vm96_vm0, %v79_v38  ;;  %v59_v3 = vld [vmem:[%s1825_s0 + $0xf8] sm:$0xff]  ;;  %v1666_v6 = vld [vmem:[%s1830_s5] sm:$0xff] }
  0x28   :  { %1306 = vmatmul.mubr.msk.f32.gmra.mxu1 %vm96_vm0, %v45_v39  ;;  %1256 = vmatprep.mubr.msk.f32.mxu0 %vm96_vm0, %v80_v40 }
  0x29   :  { %1308 = vmatprep.mubr.msk.f32.mxu1 %vm96_vm0, %v46_v41 }
  0x2b   :  { %1257 = vmatmul.mubr.msk.f32.gmra.mxu0 %vm96_vm0, %v81_v42 }
  0x2c   :  { %1309 = vmatmul.mubr.msk.f32.gmra.mxu1 %vm96_vm0, %v47_v43  ;;  %1259 = vmatprep.mubr.msk.f32.mxu0 %vm96_vm0, %v82_v44 }
  0x2d   :  { %1311 = vmatprep.mubr.msk.f32.mxu1 %vm96_vm0, %v48_v45 }
  0x2f   :  { %1260 = vmatmul.mubr.msk.f32.gmra.mxu0 %vm96_vm0, %v83_v46 }
  0x30   :  { %1312 = vmatmul.mubr.msk.f32.gmra.mxu1 %vm96_vm0, %v49_v47  ;;  %1262 = vmatprep.mubr.msk.f32.mxu0 %vm96_vm0, %v84_v48 }
  0x31   :  { %1314 = vmatprep.mubr.msk.f32.mxu1 %vm96_vm0, %v50_v49 }
  0x33   :  { %1263 = vmatmul.mubr.msk.f32.gmra.mxu0 %vm96_vm0, %v85_v50 }
  0x34   :  { %1315 = vmatmul.mubr.msk.f32.gmra.mxu1 %vm96_vm0, %v51_v51  ;;  %1265 = vmatprep.mubr.msk.f32.mxu0 %vm96_vm0, %v86_v52 }
  0x35   :  { %1317 = vmatprep.mubr.msk.f32.mxu1 %vm96_vm0, %v52_v53 }
  0x37   :  { %1266 = vmatmul.mubr.msk.f32.gmra.mxu0 %vm96_vm0, %v87_v54 }
  0x38   :  { %1318 = vmatmul.mubr.msk.f32.gmra.mxu1 %vm96_vm0, %v53_v55  ;;  %1268 = vmatprep.mubr.msk.f32.mxu0 %vm96_vm0, %v88_v56 }
  0x39   :  { %1320 = vmatprep.mubr.msk.f32.mxu1 %vm96_vm0, %v54_v57 }
  0x3b   :  { %1269 = vmatmul.mubr.msk.f32.gmra.mxu0 %vm96_vm0, %v89_v58 }
  0x3c   :  { %1321 = vmatmul.mubr.msk.f32.gmra.mxu1 %vm96_vm0, %v55_v59  ;;  %1271 = vmatprep.mubr.msk.f32.mxu0 %vm96_vm0, %v90_v60 }
  0x3d   :  { %1323 = vmatprep.mubr.msk.f32.mxu1 %vm96_vm0, %v56_v61 }
  0x3f   :  { %1272 = vmatmul.mubr.msk.f32.gmra.mxu0 %vm96_vm0, %v91_v62 }
  0x40   :  { %1324 = vmatmul.mubr.msk.f32.gmra.mxu1 %vm96_vm0, %v57_v63  ;;  %1274 = vmatprep.mubr.msk.f32.mxu0 %vm96_vm0, %v92_v0 }
  0x41   :  { %1326 = vmatprep.mubr.msk.f32.mxu1 %vm96_vm0, %v58_v1 }
  0x43   :  { %1275 = vmatmul.mubr.msk.f32.gmra.mxu0 %vm96_vm0, %v93_v2 }
  0x44   :  { %1327 = vmatmul.mubr.msk.f32.gmra.mxu1 %vm96_vm0, %v59_v3  ;;  %1223 = vmatprep.mubr.msk.f32.mxu0 %vm811_vm1, %v1666_v6 }
  0xc7   :  { %v1231_v4 = vpop.f32.mrf.mxu0 }
  0xc8   :  { %v1283_v5 = vpop.f32.mrf.mxu1 }
  0xc9   :  { %v1668_v7 = vadd.f32 %v1283_v5, %v1231_v4  ;;  %v259_v8 = vpop.f32.mrf.mxu0 }
  0xca   :  { %v580_v9 = vpop.f32.mrf.mxu1 }
  0xcb   :  { %v1672_v10 = vadd.f32 %v580_v9, %v259_v8  ;;  %v1234_v11 = vpop.f32.mrf.mxu0 }
  0xcc   :  { %v1286_v12 = vpop.f32.mrf.mxu1 }
  0xcd   :  { %v1674_v13 = vadd.f32 %v1286_v12, %v1234_v11  ;;  %v269_v14 = vpop.f32.mrf.mxu0 }
  0xce   :  { %v590_v15 = vpop.f32.mrf.mxu1 }
  0xcf   :  { %v1676_v16 = vadd.f32 %v590_v15, %v269_v14  ;;  %v1237_v17 = vpop.f32.mrf.mxu0 }
  0xd0   :  { %v1289_v18 = vpop.f32.mrf.mxu1 }
  0xd1   :  { %v1678_v19 = vadd.f32 %v1289_v18, %v1237_v17  ;;  %v279_v20 = vpop.f32.mrf.mxu0 }
  0xd2   :  { %v600_v21 = vpop.f32.mrf.mxu1 }
  0xd3   :  { %v1680_v22 = vadd.f32 %v600_v21, %v279_v20  ;;  %v1240_v23 = vpop.f32.mrf.mxu0 }
  0xd4   :  { %v1292_v24 = vpop.f32.mrf.mxu1 }
  0xd5   :  { %v1682_v25 = vadd.f32 %v1292_v24, %v1240_v23  ;;  %v289_v26 = vpop.f32.mrf.mxu0 }
  0xd6   :  { %v610_v27 = vpop.f32.mrf.mxu1 }
  0xd7   :  { %v1684_v28 = vadd.f32 %v610_v27, %v289_v26  ;;  %v1243_v29 = vpop.f32.mrf.mxu0  ;;  %v1725_v26 = vld [vmem:[%s1829_s4] ss:$0 sm:$0xff] }
  0xd8   :  { %v1295_v30 = vpop.f32.mrf.mxu1 }
  0xd9   :  { %v1686_v31 = vadd.f32 %v1295_v30, %v1243_v29  ;;  %v299_v32 = vpop.f32.mrf.mxu0 }
  0xda   :  { %v620_v33 = vpop.f32.mrf.mxu1 }
  0xdb   :  { %v1688_v34 = vadd.f32 %v620_v33, %v299_v32  ;;  %v1690_v35 = vpop.f32.mrf.mxu0 }
  0xdc   :  { %v1692_v36 = vpop.f32.mrf.mxu1 }
  0xdd   :  { %v1694_v37 = vpop.f32.mrf.mxu0 }
  0xde   :  { %v1696_v38 = vpop.f32.mrf.mxu1 }
  0xdf   :  { %v1249_v39 = vpop.f32.mrf.mxu0 }
  0xe0   :  { %v1301_v40 = vpop.f32.mrf.mxu1 }
  0xe1   :  { %v319_v41 = vpop.f32.mrf.mxu0 }
  0xe2   :  { %v640_v42 = vpop.f32.mrf.mxu1 }
  0xe3   :  { %v1252_v43 = vpop.f32.mrf.mxu0 }
  0xe4   :  { %v1304_v44 = vpop.f32.mrf.mxu1 }
  0xe5   :  { %v329_v45 = vpop.f32.mrf.mxu0  ;;  %v656_v18 = vadd.f32 %v1304_v44, %v1252_v43 }
  0xe6   :  { %v650_v46 = vpop.f32.mrf.mxu1 }
  0xe7   :  { %v1255_v47 = vpop.f32.mrf.mxu0  ;;  %v761_v29 = vadd.f32 %v1725_v26, %v656_v18  ;;  %v651_v30 = vadd.f32 %v650_v46, %v329_v45  ;;  %v641_v46 = vadd.f32 %v640_v42, %v319_v41  ;;  %v631_v42 = vadd.f32 %v1696_v38, %v1694_v37 }
  0xe8   :  { %v1307_v48 = vpop.f32.mrf.mxu1  ;;  %v755_v37 = vadd.f32 %v1725_v26, %v1686_v31 }
  0xe9   :  { %v1698_v49 = vadd.f32 %v1307_v48, %v1255_v47  ;;  %v339_v50 = vpop.f32.mrf.mxu0 }
  0xea   :  { %v660_v51 = vpop.f32.mrf.mxu1 }
  0xeb   :  { %v1700_v52 = vadd.f32 %v660_v51, %v339_v50  ;;  %v1258_v53 = vpop.f32.mrf.mxu0  ;;  %v646_v51 = vadd.f32 %v1301_v40, %v1249_v39  ;;  %v636_v40 = vadd.f32 %v1692_v36, %v1690_v35 }
  0xec   :  { %v1310_v54 = vpop.f32.mrf.mxu1 }
  0xed   :  { %v1702_v55 = vadd.f32 %v1310_v54, %v1258_v53  ;;  %v349_v56 = vpop.f32.mrf.mxu0  ;;  %v793_v53 = vmax.f32 %v761_v29, 0.0  ;;  %v760_v54 = vadd.f32 %v1725_v26, %v651_v30  ;;  %v759_v45 = vadd.f32 %v1725_v26, %v646_v51 }
  0xee   :  { %v670_v57 = vpop.f32.mrf.mxu1  ;;  %v757_v41 = vadd.f32 %v1725_v26, %v636_v40 }
  0xef   :  { %v1704_v58 = vadd.f32 %v670_v57, %v349_v56  ;;  %v1706_v59 = vpop.f32.mrf.mxu0 }
  0xf0   :  { %v1708_v60 = vpop.f32.mrf.mxu1  ;;  %v789_v36 = vmax.f32 %v757_v41, 0.0 }
  0xf1   :  { %v1710_v61 = vpop.f32.mrf.mxu0 }
  0xf2   :  { %v1712_v62 = vpop.f32.mrf.mxu1 }
  0xf3   :  { %v1714_v63 = vpop.f32.mrf.mxu0 }
  0xf4   :  { %v1716_v0 = vpop.f32.mrf.mxu1 }
  0xf5   :  { %v1718_v1 = vpop.f32.mrf.mxu0 }
  0xf6   :  { %v1720_v2 = vpop.f32.mrf.mxu1 }
  0xf7   :  { %v1267_v3 = vpop.f32.mrf.mxu0  ;;  %v691_v31 = vadd.f32 %v1720_v2, %v1718_v1  ;;  %v752_v2 = vadd.f32 %v1725_v26, %v1684_v28 }
  0xf8   :  { %v1319_v4 = vpop.f32.mrf.mxu1 }
  0xf9   :  { %v379_v5 = vpop.f32.mrf.mxu0 }
  0xfa   :  { %v700_v8 = vpop.f32.mrf.mxu1 }
  0xfb   :  { %v1270_v9 = vpop.f32.mrf.mxu0 }
  0xfc   :  { %v1322_v11 = vpop.f32.mrf.mxu1 }
  0xfd   :  { %v389_v12 = vpop.f32.mrf.mxu0 }
  0xfe   :  { %v710_v14 = vpop.f32.mrf.mxu1 }
  0xff   :  { %v1273_v15 = vpop.f32.mrf.mxu0 }
 0x100   :  { %v1325_v17 = vpop.f32.mrf.mxu1 }
 0x101   :  { %v399_v20 = vpop.f32.mrf.mxu0  ;;  %v726_v47 = vadd.f32 %v1325_v17, %v1273_v15  ;;  %v792_v15 = vmax.f32 %v760_v54, 0.0  ;;  %v716_v17 = vadd.f32 %v1322_v11, %v1270_v9  ;;  %v706_v11 = vadd.f32 %v1319_v4, %v1267_v3 }
 0x102   :  { %v720_v21 = vpop.f32.mrf.mxu1  ;;  %v696_v3 = vadd.f32 %v1716_v0, %v1714_v63  ;;  %v753_v63 = vadd.f32 %v1725_v26, %v1682_v25  ;;  %v681_v25 = vadd.f32 %v1712_v62, %v1710_v61  ;;  %v750_v61 = vadd.f32 %v1725_v26, %v1680_v22 }
 0x103   :  { %v1276_v23 = vpop.f32.mrf.mxu0  ;;  %v775_v56 = vadd.f32 %v1725_v26, %v726_v47  ;;  %v721_v57 = vadd.f32 %v720_v21, %v399_v20  ;;  %v791_v20 = vmax.f32 %v759_v45, 0.0  ;;  %v758_v21 = vadd.f32 %v1725_v26, %v641_v46 }
 0x104   :  { %v1328_v24 = vpop.f32.mrf.mxu1  ;;  %v785_v1 = vmax.f32 %v753_v63, 0.0  ;;  %v765_v62 = vadd.f32 %v1725_v26, %v1702_v55  ;;  %v764_v46 = vadd.f32 %v1725_v26, %v1704_v58  ;;  %v748_v55 = vadd.f32 %v1725_v26, %v1676_v16 }
 0x105   :  { %v736_v27 = vadd.f32 %v1328_v24, %v1276_v23  ;;  %v409_v32 = vpop.f32.mrf.mxu0  ;;  %v807_v18 = vmax.f32 %v775_v56, 0.0  ;;  %v774_v39 = vadd.f32 %v1725_v26, %v721_v57  ;;  %v773_v24 = vadd.f32 %v1725_v26, %v716_v17 }
 0x106   :  { %v730_v33 = vpop.f32.mrf.mxu1  ;;  %v790_v9 = vmax.f32 %v758_v21, 0.0  ;;  %v766_v56 = vadd.f32 %v1725_v26, %v681_v25  ;;  %v797_v45 = vmax.f32 %v765_v62, 0.0  ;;  %v796_v17 = vmax.f32 %v764_v46, 0.0 }
 0x107   :  { %v777_v48 = vadd.f32 %v1725_v26, %v736_v27  ;;  %v731_v50 = vadd.f32 %v730_v33, %v409_v32  ;;  %v711_v27 = vadd.f32 %v710_v14, %v389_v12  ;;  %v806_v29 = vmax.f32 %v774_v39, 0.0 }
 0x108   :  { %v805_v30 = vmax.f32 %v773_v24, 0.0  ;;  %v756_v12 = vadd.f32 %v1725_v26, %v631_v42  ;;  %v771_v14 = vadd.f32 %v1725_v26, %v706_v11  ;;  %v701_v32 = vadd.f32 %v700_v8, %v379_v5 }
 0x109   :  { %v809_v43 = vmax.f32 %v777_v48, 0.0  ;;  %v776_v44 = vadd.f32 %v1725_v26, %v731_v50  ;;  %v772_v35 = vadd.f32 %v1725_v26, %v711_v27  ;;  %v787_v5 = vmax.f32 %v755_v37, 0.0 }
 0x10a   :  { %v788_v38 = vmax.f32 %v756_v12, 0.0  ;;  %v803_v4 = vmax.f32 %v771_v14, 0.0  ;;  %v770_v47 = vadd.f32 %v1725_v26, %v701_v32  ;;  %v754_v8 = vadd.f32 %v1725_v26, %v1688_v34 }
 0x10b   :  { %v808_v23 = vmax.f32 %v776_v44, 0.0  ;;  %1191 = vmatprep.subr.msk.mxu0 %vm811_vm1, %v809_v43  ;;  %v804_v33 = vmax.f32 %v772_v35, 0.0  ;;  %v769_v48 = vadd.f32 %v1725_v26, %v696_v3  ;;  %v686_v43 = vadd.f32 %v1708_v60, %v1706_v59 }
 0x10c   :  { %1192 = vmatpush3.xpose.msk.msra.mxu0 %vm811_vm1, %v793_v53  ;;  %v802_v50 = vmax.f32 %v770_v47, 0.0  ;;  %v786_v0 = vmax.f32 %v754_v8, 0.0  ;;  %v768_v34 = vadd.f32 %v1725_v26, %v691_v31  ;;  %v751_v59 = vadd.f32 %v1725_v26, %v1678_v19 }
 0x10d   :  { %1193 = vmatprep.subr.msk.mxu0 %vm811_vm1, %v808_v23  ;;  %v801_v44 = vmax.f32 %v769_v48, 0.0  ;;  %v767_v51 = vadd.f32 %v1725_v26, %v686_v43  ;;  %v784_v60 = vmax.f32 %v752_v2, 0.0  ;;  %v798_v57 = vmax.f32 %v766_v56, 0.0 }
 0x10e   :  { %v800_v53 = vmax.f32 %v768_v34, 0.0  ;;  %v783_v28 = vmax.f32 %v751_v59, 0.0  ;;  %v749_v19 = vadd.f32 %v1725_v26, %v1674_v13  ;;  %v782_v23 = vmax.f32 %v750_v61, 0.0 }
 0x10f   :  { %v799_v54 = vmax.f32 %v767_v51, 0.0  ;;  %v747_v13 = vadd.f32 %v1725_v26, %v1668_v7  ;;  %v780_v58 = vmax.f32 %v748_v55, 0.0  ;;  %v762_v39 = vadd.f32 %v1725_v26, %v1700_v52 }
 0x110   :  { %1194 = vmatpush3.xpose.msk.msra.mxu0 %vm811_vm1, %v792_v15  ;;  %v781_v22 = vmax.f32 %v749_v19, 0.0  ;;  %v763_v15 = vadd.f32 %v1725_v26, %v1698_v49  ;;  %v746_v49 = vadd.f32 %v1725_v26, %v1672_v10  ;;  %v1353_v7 = vmov 1966171168  }
 0x111   :  { %1195 = vmatprep.subr.msk.mxu0 %vm811_vm1, %v807_v18  ;;  %v779_v16 = vmax.f32 %v747_v13, 0.0  ;;  %v794_v40 = vmax.f32 %v762_v39, 0.0  ;;  %v992_v52 = vunpack.c.l.s4 %v1353_v7  ;;  %v994_v21 = vlaneseq }
 0x112   :  { %v795_v18 = vmax.f32 %v763_v15, 0.0  ;;  %v983_v24 = vstv %s1831_s6 }
 0x113   :  { %v993_v26 = vunpack.c.0.s8 %v992_v52  ;;  %vm1008_vm2 = vcmp.lt.s32.totalorder %v994_v21, 256 }
 0x114   :  { %1196 = vmatpush3.xpose.msk.msra.mxu0 %vm811_vm1, %v791_v20  ;;  %v778_v20 = vmax.f32 %v746_v49, 0.0 }
 0x115   :  { %1197 = vmatprep.subr.msk.mxu0 %vm811_vm1, %v806_v29  ;;  %v995_v29 = vshrl.u32 %v994_v21, 7 }
 0x118   :  { %1198 = vmatpush3.xpose.msk.msra.mxu0 %vm811_vm1, %v790_v9 }
 0x119   :  { %1199 = vmatprep.subr.msk.mxu0 %vm811_vm1, %v805_v30  ;;  %v996_v30 = vsub.s32 %v993_v26, %v995_v29 }
 0x11c   :  { %1200 = vmatpush3.xpose.msk.msra.mxu0 %vm811_vm1, %v789_v36 }
 0x11d   :  { %1201 = vmatprep.subr.msk.mxu0 %vm811_vm1, %v804_v33 }
 0x120   :  { %1202 = vmatpush3.xpose.msk.msra.mxu0 %vm811_vm1, %v788_v38 }
 0x121   :  { %1203 = vmatprep.subr.msk.mxu0 %vm811_vm1, %v803_v4 }
 0x124   :  { %1204 = vmatpush3.xpose.msk.msra.mxu0 %vm811_vm1, %v787_v5 }
 0x125   :  { %1205 = vmatprep.subr.msk.mxu0 %vm811_vm1, %v802_v50 }
 0x128   :  { %1206 = vmatpush3.xpose.msk.msra.mxu0 %vm811_vm1, %v786_v0 }
 0x129   :  { %1207 = vmatprep.subr.msk.mxu0 %vm811_vm1, %v801_v44 }
 0x12c   :  { %1208 = vmatpush3.xpose.msk.msra.mxu0 %vm811_vm1, %v785_v1 }
 0x12d   :  { %1209 = vmatprep.subr.msk.mxu0 %vm811_vm1, %v800_v53 }
 0x130   :  { %1210 = vmatpush3.xpose.msk.msra.mxu0 %vm811_vm1, %v784_v60 }
 0x131   :  { %1211 = vmatprep.subr.msk.mxu0 %vm811_vm1, %v799_v54 }
 0x134   :  { %1212 = vmatpush3.xpose.msk.msra.mxu0 %vm811_vm1, %v783_v28 }
 0x135   :  { %1213 = vmatprep.subr.msk.mxu0 %vm811_vm1, %v798_v57 }
 0x138   :  { %1214 = vmatpush3.xpose.msk.msra.mxu0 %vm811_vm1, %v782_v23 }
 0x139   :  { %1215 = vmatprep.subr.msk.mxu0 %vm811_vm1, %v797_v45 }
 0x13c   :  { %1216 = vmatpush3.xpose.msk.msra.mxu0 %vm811_vm1, %v781_v22 }
 0x13d   :  { %1217 = vmatprep.subr.msk.mxu0 %vm811_vm1, %v796_v17 }
 0x140   :  { %1218 = vmatpush3.xpose.msk.msra.mxu0 %vm811_vm1, %v780_v58 }
 0x141   :  { %1219 = vmatprep.subr.msk.mxu0 %vm811_vm1, %v795_v18 }
 0x144   :  { %1220 = vmatpush3.xpose.msk.msra.mxu0 %vm811_vm1, %v779_v16 }
 0x145   :  { %1221 = vmatprep.subr.msk.mxu0 %vm811_vm1, %v794_v40 }
 0x148   :  { %1222 = vmatpush3.xpose.msk.msra.mxu0 %vm811_vm1, %v778_v20 }
 0x14b   :  { %1224 = vmatmul.mubr.msk.f32.vlgmr.msra.gmra.mxu0 %vm811_vm1, %v1666_v6 }
 0x20b   :  { %v977_v27 = vpop.f32.mrf.mxu0 }
 0x20c   :  { %v984_v10 = vadd.f32 %v983_v24, %v977_v27 }
 0x20d   :  { %v979_v41 = vpop.f32.mrf.mxu0 }
 0x20e   :  { %v985_v42 = vadd.f32 %v983_v24, %v979_v41  ;;  %v986_v9 = vsub.f32 %v984_v10, %v984_v10 }
 0x210   :  { %v987_v11 = vsub.f32 %v985_v42, %v985_v42 }
 0x212   :  { %v990_v35 = vcombine.low %v986_v9, %v987_v11 }
 0x214   :  { %v997_v6 = vrot.slane %v990_v35, %v996_v30 }
 0x216   :  { %v1004_v36 = vrot.slane %v997_v6, %v996_v30 }
 0x218   :  { %1010 = vst.msk [vmem:[#allocation3] sm:$0x3] %vm1008_vm2, %v1004_v36 }
 0x219   :  { %1342 = shalt.err (!%p1339_p4)
}
 0x21a   :  { %1020 = dma.vmem_to_hbm [thread:$0]  %s1018_s14, 32, %s1832_s7, [#allocation4]  }
 0x21b   :  { %1351 = dma.done.wait [#allocation4], 32  }
 0x21c   :  { %1352 = vsyncadd [#allocation4], 4294967264 }
 0x21d   :  { %1024 = vsyncpa [#allocation4], 1 }

</bundles_post_ra>
